<compile_context>
chip_gen: v7x
topology: tpu7x:2x2x1
jax: 0.10.0
libtpu: 0.0.40
codegen_flags: <defaults>
</compile_context>

<pallas_src>
import functools

import jax
import jax.numpy as jnp
from jax import lax
from jax.experimental import pallas as pl
from jax.experimental.pallas import tpu as pltpu

BN_EPS = 1e-5
LANE = 128


def _round_up(x, m):
    return (x + m - 1) // m * m


@functools.lru_cache(maxsize=None)
def _vmem_limit_bytes():
    # ~75% of physical VMEM (headroom for Mosaic-internal scratch), capped at 96 MiB.
    try:
        cap = int(getattr(pltpu.get_tpu_info(), "vmem_capacity_bytes", 0))
    except Exception:
        cap = 0
    if cap <= 0:
        cap = 64 * 1024 * 1024
    return min(96 * 1024 * 1024, (cap * 3) // 4)


# ------------------------------ conv (+ fused prev-layer BN/ReLU) ------------------------------

def _conv_kernel(x_ref, w_ref, scale_ref, shift_ref, y_ref, stats_ref,
                 *, H, Wco, Npad, fuse_input_act):
    """One image per grid step.

    x_ref     : (1, H+2, (W+2)*Ci)   spatially padded, lane-packed input.  For the fused
                layer it holds the previous conv's *raw* (pre-BN) output.
    w_ref     : (3, (W+2)*Ci, Npad)  block-Toeplitz weight, one K x N slab per dy tap.
    scale_ref : (1, (W+2)*Ci)        folded-BN scale (zero at the spatial-pad columns).
    shift_ref : (1, (W+2)*Ci)        folded-BN shift (zero at the spatial-pad columns).
    y_ref     : (1, H, W*Co)         raw (pre-BN) conv output, lane-packed (x, co).
    stats_ref : (1, 2, Npad)         per-image [sum, sum_sq] partials for this layer's BN.
    """
    a = x_ref[0]                                               # (H+2, (W+2)*Ci)
    if fuse_input_act:
        # Previous layer's BN+ReLU applied right after the block lands in VMEM.
        # Left/right pad columns stay zero (zeroed scale/shift); top/bottom pad rows are
        # forced back to zero with a row mask so the conv sees true zero padding.
        a = jnp.maximum(a * scale_ref[...] + shift_ref[...], 0.0)
        rows = lax.broadcasted_iota(jnp.int32, a.shape, 0)
        a = jnp.where((rows >= 1) & (rows <= H), a, 0.0)

    # 3x3 conv as three MXU dots (one per dy tap).  The block-Toeplitz weight performs
    # the (dx, ci) contraction and emits the lane-packed (x, co) layout directly, so
    # there is no im2col relayout and the store below is a single lane-dense write.
    acc = jnp.dot(a[0:H, :], w_ref[0], preferred_element_type=jnp.float32)
    for dy in (1, 2):
        acc = acc + jnp.dot(a[dy:dy + H, :], w_ref[dy],
                            preferred_element_type=jnp.float32)

    y_ref[0] = acc[:, :Wco] if Npad > Wco else acc             # single store, no staging

    # Per-image BN partials; the (x -> channel) fold happens in the tiny XLA glue.
    s1 = jnp.sum(acc, axis=0, keepdims=True)                   # (1, Npad)
    s2 = jnp.sum(acc * acc, axis=0, keepdims=True)             # (1, Npad)
    stats_ref[0] = jnp.concatenate([s1, s2], axis=0)


def _conv_pass(xp, wt, scale_b, shift_b, *, H, W, Co, fuse_input_act):
    N, Hp2, Kw = xp.shape
    _, Kd, Npad = wt.shape
    assert Hp2 == H + 2 and Kd == Kw
    Wco = W * Co
    if scale_b is None:                                        # layer 1: no fused input act
        scale_b = jnp.zeros((1, Kw), jnp.float32)
        shift_b = jnp.zeros((1, Kw), jnp.float32)

    kernel = functools.partial(_conv_kernel, H=H, Wco=Wco, Npad=Npad,
                               fuse_input_act=fuse_input_act)
    return pl.pallas_call(
        kernel,
        out_shape=(jax.ShapeDtypeStruct((N, H, Wco), jnp.float32),
                   jax.ShapeDtypeStruct((N, 2, Npad), jnp.float32)),
        grid_spec=pltpu.PrefetchScalarGridSpec(
            num_scalar_prefetch=0,
            grid=(N,),
            in_specs=[pl.BlockSpec((1, Hp2, Kw), lambda n: (n, 0, 0)),
                      pl.BlockSpec((3, Kd, Npad), lambda n: (0, 0, 0)),
                      pl.BlockSpec((1, Kw), lambda n: (0, 0)),
                      pl.BlockSpec((1, Kw), lambda n: (0, 0))],
            out_specs=(pl.BlockSpec((1, H, Wco), lambda n: (n, 0, 0)),
                       pl.BlockSpec((1, 2, Npad), lambda n: (n, 0, 0)))),
        compiler_params=pltpu.CompilerParams(
            dimension_semantics=("parallel",),
            vmem_limit_bytes=_vmem_limit_bytes()),
    )(xp, wt, scale_b, shift_b)


# ------------------------------ final BN + ReLU (streaming) ------------------------------

def _bn_relu_kernel(y_ref, scale_ref, shift_ref, o_ref):
    o_ref[...] = jnp.maximum(y_ref[...] * scale_ref[...] + shift_ref[...], 0.0)


def _pick_block_rows(rows, target=2048):
    """Largest divisor of `rows` that is <= target and sublane friendly."""
    if rows <= target:
        return rows
    for d in range(target, 7, -1):
        if rows % d == 0 and d % 8 == 0:
            return d
    return rows                                                # degenerate fallback


def _bn_relu_pass(y2d, scale_row, shift_row):
    rows, Wc = y2d.shape
    br = _pick_block_rows(rows)
    return pl.pallas_call(
        _bn_relu_kernel,
        out_shape=jax.ShapeDtypeStruct((rows, Wc), jnp.float32),
        grid_spec=pltpu.PrefetchScalarGridSpec(
            num_scalar_prefetch=0,
            grid=(rows // br,),
            in_specs=[pl.BlockSpec((br, Wc), lambda i: (i, 0)),
                      pl.BlockSpec((1, Wc), lambda i: (0, 0)),
                      pl.BlockSpec((1, Wc), lambda i: (0, 0))],
            out_specs=pl.BlockSpec((br, Wc), lambda i: (i, 0))),
        compiler_params=pltpu.CompilerParams(
            dimension_semantics=("parallel",),
            vmem_limit_bytes=_vmem_limit_bytes()),
    )(y2d, scale_row, shift_row)


# ------------------------------------- XLA glue -------------------------------------

def _toeplitz_weight(w, W):
    """torch (Co,Ci,3,3) conv weight -> block-Toeplitz (3, (W+2)*Ci, Npad) weight.

    B[dy, xp*Ci+ci, x*Co+co] = w[co, ci, dy, xp-x] for xp-x in {0,1,2}, else 0, so
    out[y] = sum_dy padded_in[y+dy, :] @ B[dy] is exactly the 3x3 cross-correlation with
    padding=1, emitted directly in the lane-packed (x, co) layout.
    """
    Co, Ci, _, _ = w.shape
    wh = jnp.transpose(w, (2, 3, 1, 0))                        # (dy, dx, ci, co)
    dxs = jnp.arange(3)[:, None, None]
    xps = jnp.arange(W + 2)[None, :, None]
    xs = jnp.arange(W)[None, None, :]
    sel = (xps == xs + dxs).astype(w.dtype)                    # (dx, xp, x)
    B = jnp.einsum('dkic,kpx->dpixc', wh, sel)                 # (dy, xp, ci, x, co)
    B = B.reshape(3, (W + 2) * Ci, W * Co)
    Npad = _round_up(W * Co, LANE)
    if Npad > W * Co:
        B = jnp.pad(B, ((0, 0), (0, 0), (0, Npad - W * Co)))
    return B


def _bn_fold(stats, gamma, beta, count, W, Co):
    """Per-image [sum, sum_sq] partials -> training-mode BN folded into scale/shift."""
    tot = jnp.sum(stats, axis=0)[:, :W * Co]                   # (2, W*Co)
    tot = tot.reshape(2, W, Co).sum(axis=1)                    # (2, Co)
    mean = tot[0] / count
    # E[x^2]-E[x]^2 in f32, clamped at 0 against cancellation.
    # TODO(synk): switch to a shifted two-pass variance if activations can grow large.
    var = jnp.maximum(tot[1] / count - mean * mean, 0.0)
    inv = lax.rsqrt(var + BN_EPS)
    scale = gamma * inv
    shift = beta - mean * scale
    return scale, shift


def _tile_row(v, W):
    return jnp.tile(v, W).reshape(1, W * v.shape[0])


def _tile_row_bordered(v, W):
    C = v.shape[0]
    z = jnp.zeros((C,), v.dtype)
    return jnp.concatenate([z, jnp.tile(v, W), z]).reshape(1, (W + 2) * C)


@jax.jit
def conv_block_forward(x_nchw, params):
    """conv_block forward.  Input/output are NCHW float32 (PyTorch layout)."""
    N, Ci, H, W = x_nchw.shape
    C1 = params["w1"].shape[0]
    C2 = params["w2"].shape[0]

    # NCHW -> lane-packed NHWC (N, H, W*C), with the zero spatial padding baked in.
    x = jnp.transpose(x_nchw, (0, 2, 3, 1)).reshape(N, H, W * Ci)
    xp = jnp.pad(x, ((0, 0), (1, 1), (Ci, Ci)))

    # Layer 1 conv (bias omitted: training-mode BN's mean subtraction cancels it).
    y1, stats1 = _conv_pass(xp, _toeplitz_weight(params["w1"], W), None, None,
                            H=H, W=W, Co=C1, fuse_input_act=False)
    scale1, shift1 = _bn_fold(stats1, params["g1"], params["be1"], N * H * W, W, C1)

    # Layer 2 conv with layer 1's folded BN+ReLU fused into the input read (no separate
    # BN pass / HBM round trip for the intermediate activation).
    y1p = jnp.pad(y1, ((0, 0), (1, 1), (C1, C1)))              # raw pre-BN, zero borders
    y2, stats2 = _conv_pass(y1p, _toeplitz_weight(params["w2"], W),
                            _tile_row_bordered(scale1, W),
                            _tile_row_bordered(shift1, W),
                            H=H, W=W, Co=C2, fuse_input_act=True)
    scale2, shift2 = _bn_fold(stats2, params["g2"], params["be2"], N * H * W, W, C2)

    # Final BN2 + ReLU, streamed over large flattened lane-dense blocks.
    out2d = _bn_relu_pass(y2.reshape(N * H, W * C2),
                          _tile_row(scale2, W), _tile_row(shift2, W))
    out = out2d.reshape(N, H, W, C2)
    return jnp.transpose(out, (0, 3, 1, 2))                    # NHWC -> NCHW


# -------------------- pure-JAX reference (sanity check only) --------------------

def _ref_layer(x_nhwc, w, b, g, be):
    y = lax.conv_general_dilated(
        x_nhwc, jnp.transpose(w, (2, 3, 1, 0)),                # (Co,Ci,3,3) -> HWIO
        window_strides=(1, 1), padding="SAME",
        dimension_numbers=("NHWC", "HWIO", "NHWC"))
    y = y + b
    mean = jnp.mean(y, axis=(0, 1, 2), keepdims=True)
    var = jnp.mean(jnp.square(y - mean), axis=(0, 1, 2), keepdims=True)
    y = (y - mean) * lax.rsqrt(var + BN_EPS) * g + be
    return jnp.maximum(y, 0.0)


def _ref_forward(x_nchw, p):
    x = jnp.transpose(x_nchw, (0, 2, 3, 1))
    x = _ref_layer(x, p["w1"], p["b1"], p["g1"], p["be1"])
    x = _ref_layer(x, p["w2"], p["b2"], p["g2"], p["be2"])
    return jnp.transpose(x, (0, 3, 1, 2))


if __name__ == "__main__":
    key = jax.random.PRNGKey(0)
    N, C_IN, C_OUT, H, W = 2, 4, 8, 16, 16

    ks = jax.random.split(key, 9)
    x = jax.random.normal(ks[0], (N, C_IN, H, W), jnp.float32)

    params = {
        # Conv2d(ch_in, ch_out, 3) weights/biases (PyTorch layout (Co, Ci, 3, 3)).
        "w1": 0.1 * jax.random.normal(ks[1], (C_OUT, C_IN, 3, 3), jnp.float32),
        "b1": 0.1 * jax.random.normal(ks[2], (C_OUT,), jnp.float32),
        "w2": 0.1 * jax.random.normal(ks[3], (C_OUT, C_OUT, 3, 3), jnp.float32),
        "b2": 0.1 * jax.random.normal(ks[4], (C_OUT,), jnp.float32),
        # BatchNorm2d affine params.
        "g1": 1.0 + 0.1 * jax.random.normal(ks[5], (C_OUT,), jnp.float32),
        "be1": 0.1 * jax.random.normal(ks[6], (C_OUT,), jnp.float32),
        "g2": 1.0 + 0.1 * jax.random.normal(ks[7], (C_OUT,), jnp.float32),
        "be2": 0.1 * jax.random.normal(ks[8], (C_OUT,), jnp.float32),
    }

    out = conv_block_forward(x, params)
    out = jax.block_until_ready(out)
    assert out.shape == (N, C_OUT, H, W), out.shape

    ref = jax.block_until_ready(_ref_forward(x, params))
    err = float(jnp.max(jnp.abs(out - ref)))
    assert err < 1e-3, err

    print("KERNEL_OK")
</pallas_src>

<mosaic_0001>
module attributes {stable_mosaic.version = 11 : i64} {
  func.func @_conv_kernel(%arg0: i32, %arg1: memref<1x18x72xf32, #tpu.memory_space<vmem>>, %arg2: memref<3x72x128xf32, #tpu.memory_space<vmem>>, %arg3: memref<1x72xf32, #tpu.memory_space<vmem>>, %arg4: memref<1x72xf32, #tpu.memory_space<vmem>>, %arg5: memref<1x16x128xf32, #tpu.memory_space<vmem>>, %arg6: memref<1x2x128xf32, #tpu.memory_space<vmem>>) attributes {dimension_semantics = [#tpu.dimension_semantics<parallel>], iteration_bounds = array<i64: 2>, scalar_prefetch = 0 : i64, scratch_operands = 0 : i64, tpu.core_type = #tpu.core_type<tc>, window_params = [{transform_indices = @transform_0, window_bounds = array<i64: 1, 18, 72>}, {pipeline_mode = #tpu.pipeline_mode<synchronous>, transform_indices = @transform_1, window_bounds = array<i64: 3, 72, 128>}, {pipeline_mode = #tpu.pipeline_mode<synchronous>, transform_indices = @transform_2, window_bounds = array<i64: 1, 72>}, {pipeline_mode = #tpu.pipeline_mode<synchronous>, transform_indices = @transform_3, window_bounds = array<i64: 1, 72>}, {transform_indices = @transform_4, window_bounds = array<i64: 1, 16, 128>}, {transform_indices = @transform_5, window_bounds = array<i64: 1, 2, 128>}]} {
    %c0 = arith.constant 0 : index
    %c0_0 = arith.constant 0 : index
    %c0_1 = arith.constant 0 : index
    %0 = vector.load %arg1[%c0, %c0_0, %c0_1] : memref<1x18x72xf32, #tpu.memory_space<vmem>>, vector<1x18x72xf32>
    %1 = vector.shape_cast %0 : vector<1x18x72xf32> to vector<18x72xf32>
    %2 = vector.extract_strided_slice %1 {offsets = [0, 0], sizes = [16, 72], strides = [1, 1]} : vector<18x72xf32> to vector<16x72xf32>
    %c0_2 = arith.constant 0 : index
    %c0_3 = arith.constant 0 : index
    %c0_4 = arith.constant 0 : index
    %3 = vector.load %arg2[%c0_2, %c0_3, %c0_4] : memref<3x72x128xf32, #tpu.memory_space<vmem>>, vector<1x72x128xf32>
    %4 = vector.shape_cast %3 : vector<1x72x128xf32> to vector<72x128xf32>
    %cst = arith.constant dense<0.000000e+00> : vector<16x128xf32>
    %5 = tpu.matmul %2, %4, %cst {dimension_numbers = #tpu.dot_dimension_numbers<[1], [0], [0], [1], [0, 0, 1, 1], [], []>} : vector<16x72xf32>, vector<72x128xf32>, vector<16x128xf32> -> vector<16x128xf32>
    %6 = vector.extract_strided_slice %1 {offsets = [1, 0], sizes = [16, 72], strides = [1, 1]} : vector<18x72xf32> to vector<16x72xf32>
    %c1 = arith.constant 1 : index
    %c0_5 = arith.constant 0 : index
    %c0_6 = arith.constant 0 : index
    %7 = vector.load %arg2[%c1, %c0_5, %c0_6] : memref<3x72x128xf32, #tpu.memory_space<vmem>>, vector<1x72x128xf32>
    %8 = vector.shape_cast %7 : vector<1x72x128xf32> to vector<72x128xf32>
    %cst_7 = arith.constant dense<0.000000e+00> : vector<16x128xf32>
    %9 = tpu.matmul %6, %8, %cst_7 {dimension_numbers = #tpu.dot_dimension_numbers<[1], [0], [0], [1], [0, 0, 1, 1], [], []>} : vector<16x72xf32>, vector<72x128xf32>, vector<16x128xf32> -> vector<16x128xf32>
    %10 = arith.addf %5, %9 : vector<16x128xf32>
    %11 = vector.extract_strided_slice %1 {offsets = [2, 0], sizes = [16, 72], strides = [1, 1]} : vector<18x72xf32> to vector<16x72xf32>
    %c2 = arith.constant 2 : index
    %c0_8 = arith.constant 0 : index
    %c0_9 = arith.constant 0 : index
    %12 = vector.load %arg2[%c2, %c0_8, %c0_9] : memref<3x72x128xf32, #tpu.memory_space<vmem>>, vector<1x72x128xf32>
    %13 = vector.shape_cast %12 : vector<1x72x128xf32> to vector<72x128xf32>
    %cst_10 = arith.constant dense<0.000000e+00> : vector<16x128xf32>
    %14 = tpu.matmul %11, %13, %cst_10 {dimension_numbers = #tpu.dot_dimension_numbers<[1], [0], [0], [1], [0, 0, 1, 1], [], []>} : vector<16x72xf32>, vector<72x128xf32>, vector<16x128xf32> -> vector<16x128xf32>
    %15 = arith.addf %10, %14 : vector<16x128xf32>
    %c0_11 = arith.constant 0 : index
    %c0_12 = arith.constant 0 : index
    %c0_13 = arith.constant 0 : index
    %16 = vector.load %arg5[%c0_11, %c0_12, %c0_13] : memref<1x16x128xf32, #tpu.memory_space<vmem>>, vector<1x16x128xf32>
    %17 = vector.shape_cast %16 : vector<1x16x128xf32> to vector<16x128xf32>
    %18 = vector.shape_cast %15 : vector<16x128xf32> to vector<1x16x128xf32>
    tpu.vector_store %arg5[%c0_11, %c0_12, %c0_13], %18 {strides = array<i32>} : memref<1x16x128xf32, #tpu.memory_space<vmem>>, vector<1x16x128xf32>,
    %cst_14 = arith.constant dense<0.000000e+00> : vector<128xf32>
    %19 = vector.multi_reduction <add>, %15, %cst_14 [0] : vector<16x128xf32> to vector<128xf32>
    %20 = vector.shape_cast %19 : vector<128xf32> to vector<1x128xf32>
    %21 = arith.mulf %15, %15 : vector<16x128xf32>
    %cst_15 = arith.constant dense<0.000000e+00> : vector<128xf32>
    %22 = vector.multi_reduction <add>, %21, %cst_15 [0] : vector<16x128xf32> to vector<128xf32>
    %23 = vector.shape_cast %22 : vector<128xf32> to vector<1x128xf32>
    %24 = tpu.concatenate %20, %23 in 0 : vector<1x128xf32>, vector<1x128xf32> -> vector<2x128xf32>
    %c0_16 = arith.constant 0 : index
    %c0_17 = arith.constant 0 : index
    %c0_18 = arith.constant 0 : index
    %25 = vector.load %arg6[%c0_16, %c0_17, %c0_18] : memref<1x2x128xf32, #tpu.memory_space<vmem>>, vector<1x2x128xf32>
    %26 = vector.shape_cast %25 : vector<1x2x128xf32> to vector<2x128xf32>
    %27 = vector.shape_cast %24 : vector<2x128xf32> to vector<1x2x128xf32>
    tpu.vector_store %arg6[%c0_16, %c0_17, %c0_18], %27 {strides = array<i32>} : memref<1x2x128xf32, #tpu.memory_space<vmem>>, vector<1x2x128xf32>,
    return
  }
  func.func @transform_0(%arg0: i32) -> (i32, i32, i32) {
    %c0_i32 = arith.constant 0 : i32
    %c0_i32_0 = arith.constant 0 : i32
    %c0_i32_1 = arith.constant 0 : i32
    return %arg0, %c0_i32, %c0_i32_0 : i32, i32, i32
  }
  func.func @transform_1(%arg0: i32) -> (i32, i32, i32) {
    %c0_i32 = arith.constant 0 : i32
    %c0_i32_0 = arith.constant 0 : i32
    %c0_i32_1 = arith.constant 0 : i32
    %c0_i32_2 = arith.constant 0 : i32
    return %c0_i32, %c0_i32_0, %c0_i32_1 : i32, i32, i32
  }
  func.func @transform_2(%arg0: i32) -> (i32, i32) {
    %c0_i32 = arith.constant 0 : i32
    %c0_i32_0 = arith.constant 0 : i32
    %c0_i32_1 = arith.constant 0 : i32
    return %c0_i32, %c0_i32_0 : i32, i32
  }
  func.func @transform_3(%arg0: i32) -> (i32, i32) {
    %c0_i32 = arith.constant 0 : i32
    %c0_i32_0 = arith.constant 0 : i32
    %c0_i32_1 = arith.constant 0 : i32
    return %c0_i32, %c0_i32_0 : i32, i32
  }
  func.func @transform_4(%arg0: i32) -> (i32, i32, i32) {
    %c0_i32 = arith.constant 0 : i32
    %c0_i32_0 = arith.constant 0 : i32
    %c0_i32_1 = arith.constant 0 : i32
    return %arg0, %c0_i32, %c0_i32_0 : i32, i32, i32
  }
  func.func @transform_5(%arg0: i32) -> (i32, i32, i32) {
    %c0_i32 = arith.constant 0 : i32
    %c0_i32_0 = arith.constant 0 : i32
    %c0_i32_1 = arith.constant 0 : i32
    return %arg0, %c0_i32, %c0_i32_0 : i32, i32, i32
  }
}

module attributes {stable_mosaic.version = 11 : i64} {
  func.func @_conv_kernel(%arg0: i32, %arg1: memref<1x18x144xf32, #tpu.memory_space<vmem>>, %arg2: memref<3x144x128xf32, #tpu.memory_space<vmem>>, %arg3: memref<1x144xf32, #tpu.memory_space<vmem>>, %arg4: memref<1x144xf32, #tpu.memory_space<vmem>>, %arg5: memref<1x16x128xf32, #tpu.memory_space<vmem>>, %arg6: memref<1x2x128xf32, #tpu.memory_space<vmem>>) attributes {dimension_semantics = [#tpu.dimension_semantics<parallel>], iteration_bounds = array<i64: 2>, scalar_prefetch = 0 : i64, scratch_operands = 0 : i64, tpu.core_type = #tpu.core_type<tc>, window_params = [{transform_indices = @transform_0, window_bounds = array<i64: 1, 18, 144>}, {pipeline_mode = #tpu.pipeline_mode<synchronous>, transform_indices = @transform_1, window_bounds = array<i64: 3, 144, 128>}, {pipeline_mode = #tpu.pipeline_mode<synchronous>, transform_indices = @transform_2, window_bounds = array<i64: 1, 144>}, {pipeline_mode = #tpu.pipeline_mode<synchronous>, transform_indices = @transform_3, window_bounds = array<i64: 1, 144>}, {transform_indices = @transform_4, window_bounds = array<i64: 1, 16, 128>}, {transform_indices = @transform_5, window_bounds = array<i64: 1, 2, 128>}]} {
    %c0 = arith.constant 0 : index
    %c0_0 = arith.constant 0 : index
    %c0_1 = arith.constant 0 : index
    %0 = vector.load %arg1[%c0, %c0_0, %c0_1] : memref<1x18x144xf32, #tpu.memory_space<vmem>>, vector<1x18x144xf32>
    %1 = vector.shape_cast %0 : vector<1x18x144xf32> to vector<18x144xf32>
    %c0_2 = arith.constant 0 : index
    %c0_3 = arith.constant 0 : index
    %2 = vector.load %arg3[%c0_2, %c0_3] : memref<1x144xf32, #tpu.memory_space<vmem>>, vector<1x144xf32>
    %3 = vector.broadcast %2 : vector<1x144xf32> to vector<18x144xf32>
    %4 = arith.mulf %1, %3 : vector<18x144xf32>
    %c0_4 = arith.constant 0 : index
    %c0_5 = arith.constant 0 : index
    %5 = vector.load %arg4[%c0_4, %c0_5] : memref<1x144xf32, #tpu.memory_space<vmem>>, vector<1x144xf32>
    %6 = vector.broadcast %5 : vector<1x144xf32> to vector<18x144xf32>
    %7 = arith.addf %4, %6 : vector<18x144xf32>
    %cst = arith.constant 0.000000e+00 : f32
    %8 = vector.broadcast %cst : f32 to vector<18x144xf32>
    %9 = arith.maximumf %7, %8 : vector<18x144xf32>
    %10 = tpu.iota {dimensions = array<i32: 0>} : vector<18x144xi32>
    %c1_i32 = arith.constant 1 : i32
    %11 = vector.broadcast %c1_i32 : i32 to vector<18x144xi32>
    %12 = arith.cmpi sge, %10, %11 : vector<18x144xi32>
    %c16_i32 = arith.constant 16 : i32
    %13 = vector.broadcast %c16_i32 : i32 to vector<18x144xi32>
    %14 = arith.cmpi sle, %10, %13 : vector<18x144xi32>
    %15 = arith.andi %12, %14 : vector<18x144xi1>
    %cst_6 = arith.constant 0.000000e+00 : f32
    %16 = vector.broadcast %cst_6 : f32 to vector<18x144xf32>
    %17 = arith.select %15, %9, %16 : vector<18x144xi1>, vector<18x144xf32>
    %18 = vector.extract_strided_slice %17 {offsets = [0, 0], sizes = [16, 144], strides = [1, 1]} : vector<18x144xf32> to vector<16x144xf32>
    %c0_7 = arith.constant 0 : index
    %c0_8 = arith.constant 0 : index
    %c0_9 = arith.constant 0 : index
    %19 = vector.load %arg2[%c0_7, %c0_8, %c0_9] : memref<3x144x128xf32, #tpu.memory_space<vmem>>, vector<1x144x128xf32>
    %20 = vector.shape_cast %19 : vector<1x144x128xf32> to vector<144x128xf32>
    %cst_10 = arith.constant dense<0.000000e+00> : vector<16x128xf32>
    %21 = tpu.matmul %18, %20, %cst_10 {dimension_numbers = #tpu.dot_dimension_numbers<[1], [0], [0], [1], [0, 0, 1, 1], [], []>} : vector<16x144xf32>, vector<144x128xf32>, vector<16x128xf32> -> vector<16x128xf32>
    %22 = vector.extract_strided_slice %17 {offsets = [1, 0], sizes = [16, 144], strides = [1, 1]} : vector<18x144xf32> to vector<16x144xf32>
    %c1 = arith.constant 1 : index
    %c0_11 = arith.constant 0 : index
    %c0_12 = arith.constant 0 : index
    %23 = vector.load %arg2[%c1, %c0_11, %c0_12] : memref<3x144x128xf32, #tpu.memory_space<vmem>>, vector<1x144x128xf32>
    %24 = vector.shape_cast %23 : vector<1x144x128xf32> to vector<144x128xf32>
    %cst_13 = arith.constant dense<0.000000e+00> : vector<16x128xf32>
    %25 = tpu.matmul %22, %24, %cst_13 {dimension_numbers = #tpu.dot_dimension_numbers<[1], [0], [0], [1], [0, 0, 1, 1], [], []>} : vector<16x144xf32>, vector<144x128xf32>, vector<16x128xf32> -> vector<16x128xf32>
    %26 = arith.addf %21, %25 : vector<16x128xf32>
    %27 = vector.extract_strided_slice %17 {offsets = [2, 0], sizes = [16, 144], strides = [1, 1]} : vector<18x144xf32> to vector<16x144xf32>
    %c2 = arith.constant 2 : index
    %c0_14 = arith.constant 0 : index
    %c0_15 = arith.constant 0 : index
    %28 = vector.load %arg2[%c2, %c0_14, %c0_15] : memref<3x144x128xf32, #tpu.memory_space<vmem>>, vector<1x144x128xf32>
    %29 = vector.shape_cast %28 : vector<1x144x128xf32> to vector<144x128xf32>
    %cst_16 = arith.constant dense<0.000000e+00> : vector<16x128xf32>
    %30 = tpu.matmul %27, %29, %cst_16 {dimension_numbers = #tpu.dot_dimension_numbers<[1], [0], [0], [1], [0, 0, 1, 1], [], []>} : vector<16x144xf32>, vector<144x128xf32>, vector<16x128xf32> -> vector<16x128xf32>
    %31 = arith.addf %26, %30 : vector<16x128xf32>
    %c0_17 = arith.constant 0 : index
    %c0_18 = arith.constant 0 : index
    %c0_19 = arith.constant 0 : index
    %32 = vector.load %arg5[%c0_17, %c0_18, %c0_19] : memref<1x16x128xf32, #tpu.memory_space<vmem>>, vector<1x16x128xf32>
    %33 = vector.shape_cast %32 : vector<1x16x128xf32> to vector<16x128xf32>
    %34 = vector.shape_cast %31 : vector<16x128xf32> to vector<1x16x128xf32>
    tpu.vector_store %arg5[%c0_17, %c0_18, %c0_19], %34 {strides = array<i32>} : memref<1x16x128xf32, #tpu.memory_space<vmem>>, vector<1x16x128xf32>,
    %cst_20 = arith.constant dense<0.000000e+00> : vector<128xf32>
    %35 = vector.multi_reduction <add>, %31, %cst_20 [0] : vector<16x128xf32> to vector<128xf32>
    %36 = vector.shape_cast %35 : vector<128xf32> to vector<1x128xf32>
    %37 = arith.mulf %31, %31 : vector<16x128xf32>
    %cst_21 = arith.constant dense<0.000000e+00> : vector<128xf32>
    %38 = vector.multi_reduction <add>, %37, %cst_21 [0] : vector<16x128xf32> to vector<128xf32>
    %39 = vector.shape_cast %38 : vector<128xf32> to vector<1x128xf32>
    %40 = tpu.concatenate %36, %39 in 0 : vector<1x128xf32>, vector<1x128xf32> -> vector<2x128xf32>
    %c0_22 = arith.constant 0 : index
    %c0_23 = arith.constant 0 : index
    %c0_24 = arith.constant 0 : index
    %41 = vector.load %arg6[%c0_22, %c0_23, %c0_24] : memref<1x2x128xf32, #tpu.memory_space<vmem>>, vector<1x2x128xf32>
    %42 = vector.shape_cast %41 : vector<1x2x128xf32> to vector<2x128xf32>
    %43 = vector.shape_cast %40 : vector<2x128xf32> to vector<1x2x128xf32>
    tpu.vector_store %arg6[%c0_22, %c0_23, %c0_24], %43 {strides = array<i32>} : memref<1x2x128xf32, #tpu.memory_space<vmem>>, vector<1x2x128xf32>,
    return
  }
  func.func @transform_0(%arg0: i32) -> (i32, i32, i32) {
    %c0_i32 = arith.constant 0 : i32
    %c0_i32_0 = arith.constant 0 : i32
    %c0_i32_1 = arith.constant 0 : i32
    return %arg0, %c0_i32, %c0_i32_0 : i32, i32, i32
  }
  func.func @transform_1(%arg0: i32) -> (i32, i32, i32) {
    %c0_i32 = arith.constant 0 : i32
    %c0_i32_0 = arith.constant 0 : i32
    %c0_i32_1 = arith.constant 0 : i32
    %c0_i32_2 = arith.constant 0 : i32
    return %c0_i32, %c0_i32_0, %c0_i32_1 : i32, i32, i32
  }
  func.func @transform_2(%arg0: i32) -> (i32, i32) {
    %c0_i32 = arith.constant 0 : i32
    %c0_i32_0 = arith.constant 0 : i32
    %c0_i32_1 = arith.constant 0 : i32
    return %c0_i32, %c0_i32_0 : i32, i32
  }
  func.func @transform_3(%arg0: i32) -> (i32, i32) {
    %c0_i32 = arith.constant 0 : i32
    %c0_i32_0 = arith.constant 0 : i32
    %c0_i32_1 = arith.constant 0 : i32
    return %c0_i32, %c0_i32_0 : i32, i32
  }
  func.func @transform_4(%arg0: i32) -> (i32, i32, i32) {
    %c0_i32 = arith.constant 0 : i32
    %c0_i32_0 = arith.constant 0 : i32
    %c0_i32_1 = arith.constant 0 : i32
    return %arg0, %c0_i32, %c0_i32_0 : i32, i32, i32
  }
  func.func @transform_5(%arg0: i32) -> (i32, i32, i32) {
    %c0_i32 = arith.constant 0 : i32
    %c0_i32_0 = arith.constant 0 : i32
    %c0_i32_1 = arith.constant 0 : i32
    return %arg0, %c0_i32, %c0_i32_0 : i32, i32, i32
  }
}

module attributes {stable_mosaic.version = 11 : i64} {
  func.func @_bn_relu_kernel(%arg0: i32, %arg1: memref<32x128xf32, #tpu.memory_space<vmem>>, %arg2: memref<1x128xf32, #tpu.memory_space<vmem>>, %arg3: memref<1x128xf32, #tpu.memory_space<vmem>>, %arg4: memref<32x128xf32, #tpu.memory_space<vmem>>) attributes {dimension_semantics = [#tpu.dimension_semantics<parallel>], iteration_bounds = array<i64: 1>, scalar_prefetch = 0 : i64, scratch_operands = 0 : i64, tpu.core_type = #tpu.core_type<tc>, window_params = [{transform_indices = @transform_0, window_bounds = array<i64: 32, 128>}, {pipeline_mode = #tpu.pipeline_mode<synchronous>, transform_indices = @transform_1, window_bounds = array<i64: 1, 128>}, {pipeline_mode = #tpu.pipeline_mode<synchronous>, transform_indices = @transform_2, window_bounds = array<i64: 1, 128>}, {transform_indices = @transform_3, window_bounds = array<i64: 32, 128>}]} {
    %c0 = arith.constant 0 : index
    %c0_0 = arith.constant 0 : index
    %0 = vector.load %arg1[%c0, %c0_0] : memref<32x128xf32, #tpu.memory_space<vmem>>, vector<32x128xf32>
    %c0_1 = arith.constant 0 : index
    %c0_2 = arith.constant 0 : index
    %1 = vector.load %arg2[%c0_1, %c0_2] : memref<1x128xf32, #tpu.memory_space<vmem>>, vector<1x128xf32>
    %2 = vector.broadcast %1 : vector<1x128xf32> to vector<32x128xf32>
    %3 = arith.mulf %0, %2 : vector<32x128xf32>
    %c0_3 = arith.constant 0 : index
    %c0_4 = arith.constant 0 : index
    %4 = vector.load %arg3[%c0_3, %c0_4] : memref<1x128xf32, #tpu.memory_space<vmem>>, vector<1x128xf32>
    %5 = vector.broadcast %4 : vector<1x128xf32> to vector<32x128xf32>
    %6 = arith.addf %3, %5 : vector<32x128xf32>
    %cst = arith.constant 0.000000e+00 : f32
    %7 = vector.broadcast %cst : f32 to vector<32x128xf32>
    %8 = arith.maximumf %6, %7 : vector<32x128xf32>
    %c0_5 = arith.constant 0 : index
    %c0_6 = arith.constant 0 : index
    %9 = vector.load %arg4[%c0_5, %c0_6] : memref<32x128xf32, #tpu.memory_space<vmem>>, vector<32x128xf32>
    tpu.vector_store %arg4[%c0_5, %c0_6], %8 {strides = array<i32>} : memref<32x128xf32, #tpu.memory_space<vmem>>, vector<32x128xf32>,
    return
  }
  func.func @transform_0(%arg0: i32) -> (i32, i32) {
    %c0_i32 = arith.constant 0 : i32
    %c0_i32_0 = arith.constant 0 : i32
    return %arg0, %c0_i32 : i32, i32
  }
  func.func @transform_1(%arg0: i32) -> (i32, i32) {
    %c0_i32 = arith.constant 0 : i32
    %c0_i32_0 = arith.constant 0 : i32
    %c0_i32_1 = arith.constant 0 : i32
    return %c0_i32, %c0_i32_0 : i32, i32
  }
  func.func @transform_2(%arg0: i32) -> (i32, i32) {
    %c0_i32 = arith.constant 0 : i32
    %c0_i32_0 = arith.constant 0 : i32
    %c0_i32_1 = arith.constant 0 : i32
    return %c0_i32, %c0_i32_0 : i32, i32
  }
  func.func @transform_3(%arg0: i32) -> (i32, i32) {
    %c0_i32 = arith.constant 0 : i32
    %c0_i32_0 = arith.constant 0 : i32
    return %arg0, %c0_i32 : i32, i32
  }
}

</mosaic_0001>

<bundles_post_ra>
// kernel: tile.28
= control target key start
LH: loop header
LB: loop body
LE: loop exit
PB: predicated region body
PF: predicated region fallthrough
CT: control target
= control target key end

     0   :  { %s28_s0 = inlined_call_operand.vmem [shape: f32[8], index: 0, kind: input, shape index: {}]   ;;  %s29_s1 = inlined_call_operand.vmem [shape: f32[16,8], index: 1, kind: output, shape index: {}]  }
   0x1   :  { %v4_v0 = vld [vmem:[%s28_s0] ss:$0 sm:$0xff] }
   0x2   :  { %5 = vst [vmem:[%s29_s1] sm:$0xff] %v4_v0  ;;  %8 = vst [vmem:[%s29_s1 + $0x8] sm:$0xff] %v4_v0 }

// kernel: tile.29
= control target key start
LH: loop header
LB: loop body
LE: loop exit
PB: predicated region body
PF: predicated region fallthrough
CT: control target
= control target key end

     0   :  { %s131_s10 = smov 120   ;;  %s132_s11 = smov 104   ;;  %vm3_vm0 = vcmask 64512   ;;  %vm9_vm1 = vcmask 1048512   ;;  %vm15_vm2 = vcmask 982912   ;;  %vm21_vm3 = vcmask 917312   ;;  %s207_s0 = inlined_call_operand.vmem [shape: f32[16,8], index: 0, kind: input, shape index: {}]   ;;  %s208_s1 = inlined_call_operand.vmem [shape: f32[128], index: 1, kind: output, shape index: {}]  }
   0x1   :  { %v101_v0 = vld [vmem:[%s207_s0 + $0xf] sm:$0x1]   ;;  %v103_v1 = vld [vmem:[%s207_s0 + $0xd] sm:$0x1]   ;;  %v102_v2 = vld [vmem:[%s207_s0 + $0xe] sm:$0x1]  }
   0x2   :  { %7 = vrot.lane.b32.xlu0 %v101_v0, %s131_s10  ;;  %19 = vrot.lane.b32.xlu1 %v103_v1, %s132_s11  ;;  %v104_v3 = vld [vmem:[%s207_s0 + $0xc] sm:$0x1]   ;;  %s133_s16 = smov 112   ;;  %s134_s17 = smov 96   ;;  %v105_v4 = vld [vmem:[%s207_s0 + $0xb] sm:$0x1]  }
   0x3   :  { %v106_v5 = vld [vmem:[%s207_s0 + $0xa] sm:$0x1]   ;;  %v2_v6 = vld [vmem:[%s207_s0] sm:$0x1]   ;;  %s135_s24 = smov 88   ;;  %s136_s25 = smov 80  }
   0x4   :  { %4 = vst.msk [vmem:[#allocation0] sm:$0x1] %vm3_vm0, %v2_v6   ;;  %v107_v7 = vld [vmem:[%s207_s0 + $0x9] sm:$0x1]   ;;  %v108_v8 = vld [vmem:[%s207_s0 + $0x8] sm:$0x1]  }
   0x5   :  { %s137_s30 = smov 72   ;;  %s138_s2 = smov 64   ;;  %v109_v9 = vld [vmem:[%s207_s0 + $0x7] sm:$0x1]   ;;  %v110_v10 = vld [vmem:[%s207_s0 + $0x6] sm:$0x1]  }
   0x6   :  { %13 = vrot.lane.b32.xlu0 %v102_v2, %s133_s16  ;;  %25 = vrot.lane.b32.xlu1 %v104_v3, %s134_s17  ;;  %s139_s7 = smov 56   ;;  %s140_s8 = smov 48   ;;  %v111_v11 = vld [vmem:[%s207_s0 + $0x5] sm:$0x1]   ;;  %v112_v12 = vld [vmem:[%s207_s0 + $0x4] sm:$0x1]  }
   0x7   :  { %s141_s13 = smov 40   ;;  %s142_s14 = smov 32   ;;  %v113_v13 = vld [vmem:[%s207_s0 + $0x3] sm:$0x1]   ;;  %v114_v14 = vld [vmem:[%s207_s0 + $0x2] sm:$0x1]  }
   0x8   :  { %s143_s19 = smov 24   ;;  %s144_s20 = smov 16   ;;  %v115_v15 = vld [vmem:[%s207_s0 + $0x1] sm:$0x1]   ;;  %vm27_vm4 = vcmask 851712   ;;  %vm33_vm5 = vcmask 786112  }
   0x9   :  { %s145_s0 = smov 8   ;;  %vm39_vm6 = vcmask 720512   ;;  %vm45_vm7 = vcmask 654912   ;;  %vm51_vm8 = vcmask 589312   ;;  %vm57_vm9 = vcmask 523712  }
   0xa   :  { %31 = vrot.lane.b32.xlu0 %v105_v4, %s135_s24  ;;  %37 = vrot.lane.b32.xlu1 %v106_v5, %s136_s25  ;;  %vm63_vm10 = vcmask 458112   ;;  %vm69_vm11 = vcmask 392512   ;;  %vm75_vm12 = vcmask 326912   ;;  %vm81_vm13 = vcmask 261312  }
   0xb   :  { %vm87_vm14 = vcmask 195712   ;;  %vm93_vm15 = vcmask 130112  }
   0xe   :  { %43 = vrot.lane.b32.xlu0 %v107_v7, %s137_s30  ;;  %49 = vrot.lane.b32.xlu1 %v108_v8, %s138_s2 }
  0x12   :  { %55 = vrot.lane.b32.xlu0 %v109_v9, %s139_s7  ;;  %61 = vrot.lane.b32.xlu1 %v110_v10, %s140_s8 }
  0x16   :  { %67 = vrot.lane.b32.xlu0 %v111_v11, %s141_s13  ;;  %73 = vrot.lane.b32.xlu1 %v112_v12, %s142_s14 }
  0x1a   :  { %79 = vrot.lane.b32.xlu0 %v113_v13, %s143_s19  ;;  %85 = vrot.lane.b32.xlu1 %v114_v14, %s144_s20 }
  0x1e   :  { %91 = vrot.lane.b32.xlu0 %v115_v15, %s145_s0 }
  0x74   :  { %v8_v16 = vpop.permute.xlu0 %7   ;;  %v20_v17 = vpop.permute.xlu1 %19  }
  0x75   :  { %10 = vst.msk [vmem:[#allocation0] sm:$0x1] %vm9_vm1, %v8_v16  }
  0x78   :  { %v14_v18 = vpop.permute.xlu0 %13   ;;  %v26_v19 = vpop.permute.xlu1 %25  }
  0x79   :  { %16 = vst.msk [vmem:[#allocation0] sm:$0x1] %vm15_vm2, %v14_v18  }
  0x7a   :  { %22 = vst.msk [vmem:[#allocation0] sm:$0x1] %vm21_vm3, %v20_v17  }
  0x7b   :  { %28 = vst.msk [vmem:[#allocation0] sm:$0x1] %vm27_vm4, %v26_v19  }
  0x7c   :  { %v32_v20 = vpop.permute.xlu0 %31   ;;  %v38_v21 = vpop.permute.xlu1 %37  }
  0x7d   :  { %34 = vst.msk [vmem:[#allocation0] sm:$0x1] %vm33_vm5, %v32_v20  }
  0x7e   :  { %40 = vst.msk [vmem:[#allocation0] sm:$0x1] %vm39_vm6, %v38_v21  }
  0x80   :  { %v44_v22 = vpop.permute.xlu0 %43   ;;  %v50_v23 = vpop.permute.xlu1 %49  }
  0x81   :  { %46 = vst.msk [vmem:[#allocation0] sm:$0x1] %vm45_vm7, %v44_v22  }
  0x82   :  { %52 = vst.msk [vmem:[#allocation0] sm:$0x1] %vm51_vm8, %v50_v23  }
  0x84   :  { %v56_v24 = vpop.permute.xlu0 %55   ;;  %v62_v25 = vpop.permute.xlu1 %61  }
  0x85   :  { %58 = vst.msk [vmem:[#allocation0] sm:$0x1] %vm57_vm9, %v56_v24  }
  0x86   :  { %64 = vst.msk [vmem:[#allocation0] sm:$0x1] %vm63_vm10, %v62_v25  }
  0x88   :  { %v68_v26 = vpop.permute.xlu0 %67   ;;  %v74_v27 = vpop.permute.xlu1 %73  }
  0x89   :  { %70 = vst.msk [vmem:[#allocation0] sm:$0x1] %vm69_vm11, %v68_v26  }
  0x8a   :  { %76 = vst.msk [vmem:[#allocation0] sm:$0x1] %vm75_vm12, %v74_v27  }
  0x8c   :  { %v80_v28 = vpop.permute.xlu0 %79   ;;  %v86_v29 = vpop.permute.xlu1 %85  }
  0x8d   :  { %82 = vst.msk [vmem:[#allocation0] sm:$0x1] %vm81_vm13, %v80_v28  }
  0x8e   :  { %88 = vst.msk [vmem:[#allocation0] sm:$0x1] %vm87_vm14, %v86_v29  }
  0x90   :  { %v92_v30 = vpop.permute.xlu0 %91  }
  0x91   :  { %94 = vst.msk [vmem:[#allocation0] sm:$0x1] %vm93_vm15, %v92_v30  }
  0x98   :  { %v98_v31 = vld [vmem:[#allocation0] sm:$0x1] }
  0x99   :  { %100 = vst [vmem:[%s208_s1] sm:$0x1] %v98_v31 }

// kernel: conv_block_forward.3
= control target key start
LH: loop header
LB: loop body
LE: loop exit
PB: predicated region body
PF: predicated region fallthrough
CT: control target
= control target key end

     0   :  { %s861_s18 = smov 0   ;;  %s977_s0 = inlined_call_operand.vmem [shape: f32[2,18,72], index: 0, kind: input, shape index: {}]   ;;  %s978_s1 = inlined_call_operand.vmem [shape: f32[3,72,128], index: 1, kind: input, shape index: {}]   ;;  %s979_s2 = inlined_call_operand.vmem [shape: f32[1,72], index: 2, kind: input, shape index: {}, may-alias: {2,3}]   ;;  %s980_s3 = inlined_call_operand.vmem [shape: f32[1,72], index: 3, kind: input, shape index: {}, may-alias: {2,3}]   ;;  %s981_s4 = inlined_call_operand.vmem [shape: f32[2,16,128], index: 4, kind: output, shape index: {0}]   ;;  %s982_s5 = inlined_call_operand.vmem [shape: f32[2,2,128], index: 5, kind: output, shape index: {1}]  }
   0x1 LB: > { %s630_s2 = sadd.s32 4294967295, %s829_s18   ;;  %p634_p0 = scmp.ge.s32.totalorder %s829_s18, 1  ;;  %s829_s18 = sphi %s861_s18, %s16_s18  }
   0x2   : > { %p190_p1 = scmp.lt.s32.totalorder %s829_s18, 3 }
   0x4   : > { %p191_p2 = pnand %p634_p0, %p190_p1 }
   0x5   : > { %v239_v0 = vld [vmem:[%s978_s1] sm:$0xff] (!%p191_p2)  ;;  %v240_v1 = vld [vmem:[%s978_s1 + $0x8] sm:$0xff] (!%p191_p2)  ;;  %v241_v2 = vld [vmem:[%s978_s1 + $0x10] sm:$0xff] (!%p191_p2)  ;;  %p222_p3 = scmp.lt.s32.totalorder (!%p191_p2), %s630_s2, 1  ;;  %vm267_vm0 = vcmask (!%p191_p2), 588800   ;;  %vm261_vm1 = vcmask (!%p191_p2), 1046528  }
   0x6   : > { %194 = sbr.rel (%p191_p2) target bundleno = 277 (0x115), region = 36  ;;  %v778_v3 = vpack.c.bf16 (!%p191_p2), %v240_v1, %v239_v0  ;;  %v242_v4 = vld [vmem:[%s978_s1 + $0x18] sm:$0xff] (!%p191_p2)  ;;  %v243_v6 = vld [vmem:[%s978_s1 + $0x20] sm:$0xff] (!%p191_p2)  ;;  %v244_v7 = vld [vmem:[%s978_s1 + $0x28] sm:$0xff] (!%p191_p2)  ;;  %vm436_vm2 = vcmask (!%p191_p2), 1045504   ;;  %vm541_vm3 = vcmask (!%p191_p2), 1040384  }
   0x7   : > { %v782_v5 = vpack.c.bf16 (!%p191_p2), %v242_v4, %v241_v2  ;;  %v639_v8 = vld [vmem:[%s978_s1 + $0x48] sm:$0xff] (!%p191_p2)  ;;  %v640_v9 = vld [vmem:[%s978_s1 + $0x50] sm:$0xff] (!%p191_p2)  ;;  %v641_v11 = vld [vmem:[%s978_s1 + $0x58] sm:$0xff] (!%p191_p2)  ;;  %v786_v13 = vpack.c.bf16 (!%p191_p2), %v244_v7, %v243_v6 }
   0x8   : > { %779 = vmatprep.subr.bf16.mxu0 (!%p191_p2), %v778_v3  ;;  %v762_v10 = vpack.c.bf16 (!%p191_p2), %v640_v9, %v639_v8  ;;  %v642_v12 = vld [vmem:[%s978_s1 + $0x60] sm:$0xff] (!%p191_p2)  ;;  %v643_v15 = vld [vmem:[%s978_s1 + $0x68] sm:$0xff] (!%p191_p2)  ;;  %v245_v16 = vld [vmem:[%s978_s1 + $0x30] sm:$0xff] (!%p191_p2) }
   0x9   : > { %781 = vmatpush3.bf16.msra.mxu0 (!%p191_p2), %v778_v3  ;;  %v766_v14 = vpack.c.bf16 (!%p191_p2), %v642_v12, %v641_v11  ;;  %v246_v17 = vld [vmem:[%s978_s1 + $0x38] sm:$0xff] (!%p191_p2)  ;;  %v644_v18 = vld [vmem:[%s978_s1 + $0x70] sm:$0xff] (!%p191_p2)  ;;  %v646_v25 = vld [vmem:[%s978_s1 + $0x80] sm:$0xff] (!%p191_p2) }
   0xa   : > { %783 = vmatprep.subr.bf16.mxu0 (!%p191_p2), %v782_v5  ;;  %763 = vmatprep.subr.bf16.mxu1 (!%p191_p2), %v762_v10  ;;  %v770_v22 = vpack.c.bf16 (!%p191_p2), %v644_v18, %v643_v15  ;;  %v790_v23 = vpack.c.bf16 (!%p191_p2), %v246_v17, %v245_v16  ;;  %v645_v24 = vld [vmem:[%s978_s1 + $0x78] sm:$0xff] (!%p191_p2)  ;;  %v247_v29 = vld [vmem:[%s978_s1 + $0x40] sm:$0xff] (!%p191_p2)  ;;  %v652_v31 = vld [vmem:[%s978_s1 + $0x90] sm:$0xff] (!%p191_p2) }
   0xb   : > { %765 = vmatpush3.bf16.msra.mxu1 (!%p191_p2), %v762_v10  ;;  %v774_v28 = vpack.c.bf16 (!%p191_p2), %v646_v25, %v645_v24  ;;  %v653_v32 = vld [vmem:[%s978_s1 + $0x98] sm:$0xff] (!%p191_p2)  ;;  %v654_v35 = vld [vmem:[%s978_s1 + $0xa0] sm:$0xff] (!%p191_p2)  ;;  %v655_v36 = vld [vmem:[%s978_s1 + $0xa8] sm:$0xff] (!%p191_p2) }
   0xc   : > { %767 = vmatprep.subr.bf16.mxu1 (!%p191_p2), %v766_v14  ;;  %v794_v38 = vpack.c.bf16 (!%p191_p2), %v653_v32, %v652_v31  ;;  %v647_v39 = vld [vmem:[%s978_s1 + $0x88] sm:$0xff] (!%p191_p2)  ;;  %v798_v40 = vpack.c.bf16 (!%p191_p2), %v655_v36, %v654_v35  ;;  %v656_v42 = vld [vmem:[%s978_s1 + $0xb0] sm:$0xff] (!%p191_p2)  ;;  %v657_v43 = vld [vmem:[%s978_s1 + $0xb8] sm:$0xff] (!%p191_p2) }
   0xd   : > { %s984_s2 = smov (!%p222_p3, %s630_s2), 1  ;;  %785 = vmatpush3.bf16.msra.mxu0 %v782_v5  ;;  %v802_v45 = vpack.c.bf16 %v657_v43, %v656_v42  ;;  %v658_v46 = vld [vmem:[%s978_s1 + $0xc0] sm:$0xff]  ;;  %v659_v47 = vld [vmem:[%s978_s1 + $0xc8] sm:$0xff]  ;;  %v660_v50 = vld [vmem:[%s978_s1 + $0xd0] sm:$0xff] }
   0xe   : > { %s814_s9 = smul.u32 24, %s984_s2  ;;  %787 = vmatprep.subr.bf16.mxu0 %v786_v13  ;;  %v806_v48 = vpack.c.bf16 %v659_v47, %v658_v46  ;;  %s665_s26 = sshll.u32 %s984_s2, 4 }
   0xf   : > { %769 = vmatpush3.bf16.msra.mxu1 %v766_v14  ;;  %s231_s29 = scalar_lea.vmem %s981_s4, %s665_s26  ;;  %s638_s30 = sshll.u32 %s984_s2, 1 }
  0x10   : > { %s226_s22 = scalar_lea.vmem %s977_s0, %s814_s9  ;;  %771 = vmatprep.subr.bf16.mxu1 %v770_v22  ;;  %s235_s8 = scalar_lea.vmem %s982_s5, %s638_s30 }
  0x11   : > { %v236_v19 = vld [vmem:[%s226_s22] sm:$0xff]  ;;  %v237_v21 = vld [vmem:[%s226_s22 + $0x8] sm:$0xff]  ;;  %789 = vmatpush3.bf16.msra.mxu0 %v786_v13  ;;  %v238_v30 = vld [vmem:[%s226_s22 + $0x10] sm:$0x3] }
  0x12   : > { %v262_v20 = vrot.slane %v236_v19, 1  ;;  %738 = vmatprep.mubr.msk.f32.mxu0 %vm267_vm0, %v236_v19  ;;  %v263_v26 = vrot.slane %v237_v21, 1  ;;  %791 = vmatprep.subr.bf16.mxu0 %v790_v23  ;;  %v437_v33 = vrot.slane %v236_v19, 2  ;;  %v438_v34 = vrot.slane %v237_v21, 2 }
  0x13   : > { %773 = vmatpush3.bf16.msra.mxu1 %v770_v22  ;;  %v265_v37 = vrot.slane %v238_v30, 1  ;;  %v440_v49 = vrot.slane %v238_v30, 2 }
  0x14   : > { %v264_v27 = vsel %vm261_vm1, %v262_v20, %v263_v26  ;;  %775 = vmatprep.subr.bf16.mxu1 %v774_v28  ;;  %v439_v41 = vsel %vm436_vm2, %v437_v33, %v438_v34 }
  0x15   : > { %717 = vmatprep.mubr.msk.f32.mxu1 %vm267_vm0, %v264_v27  ;;  %793 = vmatpush3.bf16.msra.mxu0 %v790_v23  ;;  %v266_v44 = vsel %vm261_vm1, %v263_v26, %v265_v37  ;;  %v441_v51 = vsel %vm436_vm2, %v438_v34, %v440_v49 }
  0x16   : > { %736 = vmatprep.subr.mxu0 %v247_v29 }
  0x17   : > { %777 = vmatpush3.bf16.msra.mxu1 %v774_v28 }
  0x18   : > { %715 = vmatprep.subr.mxu1 %v647_v39 }
  0x19   : > { %737 = vmatpush3.msra.mxu0 %v247_v29 }
  0x1a   : > { %795 = vmatprep.subr.bf16.mxu0 %v794_v38  ;;  %739 = vmatmul.mubr.msk.f32.vlgmr.msra.gmra.mrb[0].mxu0 %vm267_vm0, %v237_v21 }
  0x1b   : > { %797 = vmatpush3.bf16.msra.mxu0 %v794_v38  ;;  %759 = vmatprep.mubr.msk.f32.mxu0 %vm267_vm0, %v439_v41 }
  0x1c   : > { %799 = vmatprep.subr.bf16.mxu0 %v798_v40  ;;  %716 = vmatpush3.msra.mxu1 %v647_v39 }
  0x1d   : > { %718 = vmatmul.mubr.msk.f32.vlgmr.msra.gmra.mrb[0].mxu1 %vm267_vm0, %v266_v44 }
  0x1f   : > { %801 = vmatpush3.bf16.msra.mxu0 %v798_v40 }
  0x20   : > { %803 = vmatprep.subr.bf16.mxu0 %v802_v45 }
  0x23   : > { %805 = vmatpush3.bf16.msra.mxu0 %v802_v45 }
  0x24   : > { %807 = vmatprep.subr.bf16.mxu0 %v806_v48 }
  0x27   : > { %809 = vmatpush3.bf16.msra.mxu0 %v806_v48 }
  0x28   : > { %757 = vmatprep.subr.mxu0 %v660_v50 }
  0x2b   : > { %758 = vmatpush3.msra.mxu0 %v660_v50 }
  0x2c   : > { %760 = vmatmul.mubr.msk.f32.vlgmr.msra.gmra.mrb[0].mxu0 %vm267_vm0, %v441_v51 }
  0xf0   : > { %v719_v52 = vpop.f32.mrb[0].mxu1 }
  0xf1   : > { %v338_v53 = vpop.f32.mrb[1].mxu1 }
  0xff   : > { %v761_v54 = vpop.f32.mrb[0].mxu0 }
 0x100   : > { %v810_v55 = vadd.f32 %v761_v54, %v719_v52  ;;  %v512_v56 = vpop.f32.mrb[1].mxu0 }
 0x101   : > { %v811_v57 = vadd.f32 %v512_v56, %v338_v53 }
 0x102   : > { %524 = vst [vmem:[%s231_s29 + $0x8] sm:$0xff] %v810_v55  ;;  %v533_v58 = vmul.f32 %v810_v55, %v810_v55 }
 0x103   : > { %523 = vst [vmem:[%s231_s29] sm:$0xff] %v811_v57  ;;  %v525_v59 = vadd.f32 %v811_v57, %v810_v55  ;;  %v532_v60 = vmul.f32 %v811_v57, %v811_v57 }
 0x105   : > { %v526_v61 = vrot.slane %v525_v59, 4  ;;  %v534_v62 = vadd.f32 %v533_v58, %v532_v60 }
 0x107   : > { %v527_v63 = vadd.f32 %v526_v61, %v525_v59  ;;  %v535_v0 = vrot.slane %v534_v62, 4 }
 0x109   : > { %v528_v1 = vrot.slane %v527_v63, 2  ;;  %v536_v2 = vadd.f32 %v535_v0, %v534_v62 }
 0x10b   : > { %v529_v3 = vadd.f32 %v528_v1, %v527_v63  ;;  %v537_v4 = vrot.slane %v536_v2, 2 }
 0x10d   : > { %v530_v5 = vrot.slane %v529_v3, 1  ;;  %v538_v6 = vadd.f32 %v537_v4, %v536_v2 }
 0x10f   : > { %v539_v7 = vrot.slane %v538_v6, 1  ;;  %v531_v8 = vadd.f32 %v530_v5, %v529_v3 }
 0x111   : > { %v540_v9 = vadd.f32 %v539_v7, %v538_v6 }
 0x113   : > { %v542_v10 = vsel %vm541_vm3, %v531_v8, %v540_v9 }
 0x114   : > { %543 = vst [vmem:[%s235_s8] sm:$0x3] %v542_v10 }
 0x115 PF: > { %s16_s18 = sadd.s32 1, %s829_s18  }
 0x116   : > { %p13_p4 = scmp.ge.s32.totalorder %s16_s18, 4  }
 0x118   :  { %15 = sbr.rel (!%p13_p4) target bundleno = 1 (0x1), region = 80 }

// kernel: conv_block_forward.4
= control target key start
LH: loop header
LB: loop body
LE: loop exit
PB: predicated region body
PF: predicated region fallthrough
CT: control target
= control target key end

     0   :  { %s946_s18 = smov 0   ;;  %s1235_s0 = inlined_call_operand.vmem [shape: f32[2,18,144], index: 0, kind: input, shape index: {}]   ;;  %s1236_s1 = inlined_call_operand.vmem [shape: f32[3,144,128], index: 1, kind: input, shape index: {}]   ;;  %s1237_s2 = inlined_call_operand.vmem [shape: f32[1,144], index: 2, kind: input, shape index: {}]   ;;  %s1238_s3 = inlined_call_operand.vmem [shape: f32[1,144], index: 3, kind: input, shape index: {}]   ;;  %s1239_s4 = inlined_call_operand.vmem [shape: f32[2,16,128], index: 4, kind: output, shape index: {0}]   ;;  %s1240_s5 = inlined_call_operand.vmem [shape: f32[2,2,128], index: 5, kind: output, shape index: {1}]  }
   0x1 LB: > { %s738_s19 = sadd.s32 4294967295, %s913_s18   ;;  %p742_p0 = scmp.ge.s32.totalorder %s913_s18, 1  ;;  %s913_s18 = sphi %s946_s18, %s16_s18  }
   0x2   : > { %p190_p1 = scmp.lt.s32.totalorder %s913_s18, 3 }
   0x4   : > { %p191_p2 = pnand %p742_p0, %p190_p1 }
   0x5   : > { %v747_v0 = vld [vmem:[%s1236_s1 + $0x90] sm:$0xff] (!%p191_p2)  ;;  %v748_v1 = vld [vmem:[%s1236_s1 + $0x98] sm:$0xff] (!%p191_p2)  ;;  %v303_v2 = vld [vmem:[%s1236_s1] sm:$0xff] (!%p191_p2)  ;;  %p222_p3 = scmp.lt.s32.totalorder (!%p191_p2), %s738_s19, 1  ;;  %v915_v3 = vmov (!%p191_p2), 0.0|0.0   ;;  %v244_v8 = vlaneseq (!%p191_p2)  ;;  %vm359_vm1 = vcmask (!%p191_p2), 130048  }
   0x6   : > { %194 = sbr.rel (%p191_p2) target bundleno = 312 (0x138), region = 36  ;;  %793 = vmatprep.subr.bf16.mxu1 (!%p191_p2), %v915_v3  ;;  %820 = vmatprep.subr.bf16.mxu0 (!%p191_p2), %v915_v3  ;;  %v794_v4 = vpack.c.bf16 (!%p191_p2), %v748_v1, %v747_v0  ;;  %v304_v5 = vld [vmem:[%s1236_s1 + $0x8] sm:$0xff] (!%p191_p2)  ;;  %v749_v6 = vld [vmem:[%s1236_s1 + $0xa0] sm:$0xff] (!%p191_p2)  ;;  %v305_v10 = vld [vmem:[%s1236_s1 + $0x10] sm:$0xff] (!%p191_p2)  ;;  %vm346_vm2 = vcmask (!%p191_p2), 1046528   ;;  %vm537_vm4 = vcmask (!%p191_p2), 1045504  }
   0x7   : > { %v750_v7 = vld [vmem:[%s1236_s1 + $0xa8] sm:$0xff] (!%p191_p2)  ;;  %v821_v9 = vpack.c.bf16 (!%p191_p2), %v304_v5, %v303_v2  ;;  %v306_v11 = vld [vmem:[%s1236_s1 + $0x18] sm:$0xff] (!%p191_p2)  ;;  %v751_v14 = vld [vmem:[%s1236_s1 + $0xb0] sm:$0xff] (!%p191_p2)  ;;  %v997_v18 = vshrl.u32 (!%p191_p2), %v244_v8, 7  ;;  %vm649_vm5 = vcmask (!%p191_p2), 1040384  }
   0x8   : > { %795 = vmatpush1.bf16.msra.mxu1 (!%p191_p2), %v794_v4  ;;  %v797_v12 = vpack.c.bf16 (!%p191_p2), %v750_v7, %v749_v6  ;;  %v824_v13 = vpack.c.bf16 (!%p191_p2), %v306_v11, %v305_v10  ;;  %v752_v15 = vld [vmem:[%s1236_s1 + $0xb8] sm:$0xff] (!%p191_p2)  ;;  %v307_v16 = vld [vmem:[%s1236_s1 + $0x20] sm:$0xff] (!%p191_p2)  ;;  %v308_v17 = vld [vmem:[%s1236_s1 + $0x28] sm:$0xff] (!%p191_p2) }
   0x9   : > { %822 = vmatpush1.bf16.msra.mxu0 (!%p191_p2), %v821_v9  ;;  %796 = vmatprep.subr.bf16.mxu1 (!%p191_p2), %v915_v3  ;;  %v800_v19 = vpack.c.bf16 (!%p191_p2), %v752_v15, %v751_v14  ;;  %v827_v20 = vpack.c.bf16 (!%p191_p2), %v308_v17, %v307_v16  ;;  %v753_v21 = vld [vmem:[%s1236_s1 + $0xc0] sm:$0xff] (!%p191_p2)  ;;  %v754_v22 = vld [vmem:[%s1236_s1 + $0xc8] sm:$0xff] (!%p191_p2)  ;;  %v309_v23 = vld [vmem:[%s1236_s1 + $0x30] sm:$0xff] (!%p191_p2)  ;;  %v250_v25 = vsub.s32 (!%p191_p2), 1, %v997_v18  ;;  %v246_v26 = vsub.s32 (!%p191_p2), 0, %v997_v18 }
   0xa   : > { %823 = vmatprep.subr.bf16.mxu0 (!%p191_p2), %v915_v3  ;;  %v310_v24 = vld [vmem:[%s1236_s1 + $0x38] sm:$0xff] (!%p191_p2)  ;;  %v803_v27 = vpack.c.bf16 (!%p191_p2), %v754_v22, %v753_v21  ;;  %v755_v28 = vld [vmem:[%s1236_s1 + $0xd0] sm:$0xff] (!%p191_p2)  ;;  %v311_v30 = vld [vmem:[%s1236_s1 + $0x40] sm:$0xff] (!%p191_p2)  ;;  %vm288_vm0 = vcmp.ge.s32.totalorder (!%p191_p2), %v997_v18, 1  ;;  %v287_v9 = vadd.s32 (!%p191_p2), 16, %v997_v18 }
   0xb   : > { %v756_v29 = vld [vmem:[%s1236_s1 + $0xd8] sm:$0xff] (!%p191_p2)  ;;  %v830_v31 = vpack.c.bf16 (!%p191_p2), %v310_v24, %v309_v23  ;;  %v242_v34 = vld [vmem:[%s1237_s2] sm:$0x3] (!%p191_p2)  ;;  %v312_v35 = vld [vmem:[%s1236_s1 + $0x48] sm:$0xff] (!%p191_p2) }
   0xc   : > { %798 = vmatpush1.bf16.msra.mxu1 (!%p191_p2), %v797_v12  ;;  %v251_v36 = vrot.slane (!%p191_p2), %v242_v34, %v250_v25  ;;  %v260_v37 = vld [vmem:[%s1238_s3] sm:$0x3] (!%p191_p2)  ;;  %v247_v39 = vrot.slane (!%p191_p2), %v242_v34, %v246_v26  ;;  %v806_v41 = vpack.c.bf16 (!%p191_p2), %v756_v29, %v755_v28  ;;  %v833_v44 = vpack.c.bf16 (!%p191_p2), %v312_v35, %v311_v30  ;;  %v758_v46 = vld [vmem:[%s1236_s1 + $0xe8] sm:$0xff] (!%p191_p2)  ;;  %v313_v50 = vld [vmem:[%s1236_s1 + $0x50] sm:$0xff] (!%p191_p2) }
   0xd   : > { %s1242_s19 = smov (!%p222_p3, %s738_s19), 1  ;;  %825 = vmatpush1.bf16.msra.mxu0 %v824_v13  ;;  %799 = vmatprep.subr.bf16.mxu1 %v915_v3  ;;  %v269_v40 = vrot.slane %v260_v37, %v250_v25  ;;  %v757_v45 = vld [vmem:[%s1236_s1 + $0xe0] sm:$0xff]  ;;  %v265_v49 = vrot.slane %v260_v37, %v246_v26  ;;  %v314_v51 = vld [vmem:[%s1236_s1 + $0x58] sm:$0xff]  ;;  %v759_v55 = vld [vmem:[%s1236_s1 + $0xf0] sm:$0xff]  ;;  %vm293_vm3 = vcmp.le.s32.totalorder %v287_v9, 16 }
   0xe   : > { %s897_s21 = smul.u32 48, %s1242_s19  ;;  %826 = vmatprep.subr.bf16.mxu0 %v915_v3  ;;  %v809_v54 = vpack.c.bf16 %v758_v46, %v757_v45  ;;  %v836_v59 = vpack.c.bf16 %v314_v51, %v313_v50  ;;  %v760_v60 = vld [vmem:[%s1236_s1 + $0xf8] sm:$0xff]  ;;  %v315_v0 = vld [vmem:[%s1236_s1 + $0x60] sm:$0xff]  ;;  %v316_v1 = vld [vmem:[%s1236_s1 + $0x68] sm:$0xff]  ;;  %s746_s25 = sshll.u32 %s1242_s19, 1 }
   0xf   : > { %v812_v7 = vpack.c.bf16 %v760_v60, %v759_v55  ;;  %v839_v11 = vpack.c.bf16 %v316_v1, %v315_v0  ;;  %v761_v12 = vld [vmem:[%s1236_s1 + $0x100] sm:$0xff]  ;;  %v762_v13 = vld [vmem:[%s1236_s1 + $0x108] sm:$0xff]  ;;  %v317_v17 = vld [vmem:[%s1236_s1 + $0x70] sm:$0xff]  ;;  %s235_s28 = scalar_lea.vmem %s1240_s5, %s746_s25 }
  0x10   : > { %s1016_s7 = scalar_lea.vmem %s1235_s0, %s897_s21  ;;  %801 = vmatpush1.bf16.msra.mxu1 %v800_v19  ;;  %v318_v19 = vld [vmem:[%s1236_s1 + $0x78] sm:$0xff]  ;;  %v815_v21 = vpack.c.bf16 %v762_v13, %v761_v12  ;;  %v763_v25 = vld [vmem:[%s1236_s1 + $0x110] sm:$0xff]  ;;  %v319_v29 = vld [vmem:[%s1236_s1 + $0x80] sm:$0xff]  ;;  %s792_s21 = sshll.u32 %s1242_s19, 4 }
  0x11   : > { %828 = vmatpush1.bf16.msra.mxu0 %v827_v20  ;;  %802 = vmatprep.subr.bf16.mxu1 %v915_v3  ;;  %v237_v32 = vld [vmem:[%s1016_s7 + $0x8] sm:$0xff]  ;;  %v239_v33 = vld [vmem:[%s1016_s7 + $0x18] sm:$0xff]  ;;  %v236_v38 = vld [vmem:[%s1016_s7] sm:$0xff]  ;;  %v842_v24 = vpack.c.bf16 %v318_v19, %v317_v17  ;;  %s231_s24 = scalar_lea.vmem %s1239_s4, %s792_s21 }
  0x12   : > { %829 = vmatprep.subr.bf16.mxu0 %v915_v3  ;;  %v255_v42 = vmul.f32 %v251_v36, %v237_v32  ;;  %v257_v43 = vmul.f32 %v251_v36, %v239_v33  ;;  %v238_v47 = vld [vmem:[%s1016_s7 + $0x10] sm:$0xff]  ;;  %v254_v48 = vmul.f32 %v247_v39, %v236_v38  ;;  %v241_v62 = vld [vmem:[%s1016_s7 + $0x28] sm:$0x3]  ;;  %v240_v63 = vld [vmem:[%s1016_s7 + $0x20] sm:$0x3] }
  0x13   : > { %v256_v58 = vmul.f32 %v247_v39, %v238_v47  ;;  %v259_v6 = vmul.f32 %v251_v36, %v241_v62  ;;  %v258_v10 = vmul.f32 %v247_v39, %v240_v63  ;;  %v764_v26 = vld [vmem:[%s1236_s1 + $0x118] sm:$0xff]  ;;  %v320_v30 = vld [vmem:[%s1236_s1 + $0x88] sm:$0xff]  ;;  %v770_v36 = vld [vmem:[%s1236_s1 + $0x120] sm:$0xff] }
  0x14   : > { %804 = vmatpush1.bf16.msra.mxu1 %v803_v27  ;;  %v273_v52 = vadd.f32 %v269_v40, %v255_v42  ;;  %v275_v53 = vadd.f32 %v269_v40, %v257_v43  ;;  %v1068_v61 = vadd.f32 %v265_v49, %v254_v48  ;;  %v845_v35 = vpack.c.bf16 %v320_v30, %v319_v29  ;;  %v771_v37 = vld [vmem:[%s1236_s1 + $0x128] sm:$0xff]  ;;  %v772_v43 = vld [vmem:[%s1236_s1 + $0x130] sm:$0xff]  ;;  %v774_v51 = vld [vmem:[%s1236_s1 + $0x140] sm:$0xff] }
  0x15   : > { %831 = vmatpush1.bf16.msra.mxu0 %v830_v31  ;;  %805 = vmatprep.subr.bf16.mxu1 %v915_v3  ;;  %v274_v8 = vadd.f32 %v265_v49, %v256_v58  ;;  %v277_v16 = vadd.f32 %v269_v40, %v259_v6  ;;  %v276_v20 = vadd.f32 %v265_v49, %v258_v10  ;;  %v776_v55 = vld [vmem:[%s1236_s1 + $0x150] sm:$0xff]  ;;  %v778_v58 = vld [vmem:[%s1236_s1 + $0x160] sm:$0xff]  ;;  %v781_v62 = vld [vmem:[%s1236_s1 + $0x178] sm:$0xff] }
  0x16   : > { %832 = vmatprep.subr.bf16.mxu0 %v915_v3  ;;  %v279_v56 = vmax.f32 %v273_v52, 0.0  ;;  %v1062_v57 = vmax.f32 %v275_v53, 0.0  ;;  %v278_v15 = vmax.f32 %v1068_v61, 0.0  ;;  %v818_v31 = vpack.c.bf16 %v764_v26, %v763_v25  ;;  %v775_v52 = vld [vmem:[%s1236_s1 + $0x148] sm:$0xff]  ;;  %v780_v61 = vld [vmem:[%s1236_s1 + $0x170] sm:$0xff]  ;;  %v782_v0 = vld [vmem:[%s1236_s1 + $0x180] sm:$0xff] }
  0x17   : > { %v1105_v22 = vmax.f32 %v274_v8, 0.0  ;;  %v283_v23 = vmax.f32 %v277_v16, 0.0  ;;  %v282_v28 = vmax.f32 %v276_v20, 0.0  ;;  %v854_v53 = vpack.c.bf16 %v775_v52, %v774_v51  ;;  %v783_v1 = vld [vmem:[%s1236_s1 + $0x188] sm:$0xff] }
  0x18   : > { %807 = vmatpush1.bf16.msra.mxu1 %v806_v41  ;;  %v1081_v2 = vsel %vm288_vm0, %v279_v56, 0.0  ;;  %v351_v4 = vrot.slane %v1062_v57, 1  ;;  %v1116_v27 = vsel %vm288_vm0, %v278_v15, 0.0  ;;  %v848_v41 = vpack.c.bf16 %v771_v37, %v770_v36  ;;  %v777_v56 = vld [vmem:[%s1236_s1 + $0x158] sm:$0xff]  ;;  %v787_v8 = vld [vmem:[%s1236_s1 + $0x1a8] sm:$0xff] }
  0x19   : > { %834 = vmatpush1.bf16.msra.mxu0 %v833_v44  ;;  %808 = vmatprep.subr.bf16.mxu1 %v915_v3  ;;  %v350_v5 = vrot.slane %v1081_v2, 1  ;;  %v347_v32 = vrot.slane %v1116_v27, 1  ;;  %v348_v33 = vrot.slane %v1105_v22, 1  ;;  %v302_v34 = vsel %vm293_vm3, %v283_v23, 0.0  ;;  %v773_v44 = vld [vmem:[%s1236_s1 + $0x138] sm:$0xff] }
  0x1a   : > { %835 = vmatprep.subr.bf16.mxu0 %v915_v3  ;;  %767 = vmatprep.mubr.msk.f32.mxu0 %vm359_vm1, %v1081_v2  ;;  %v1134_v38 = vsel %vm293_vm3, %v282_v28, 0.0  ;;  %v355_v39 = vrot.slane %v302_v34, 1  ;;  %v541_v46 = vrot.slane %v1081_v2, 2  ;;  %v542_v47 = vrot.slane %v1062_v57, 2 }
  0x1b   : > { %v352_v14 = vsel %vm346_vm2, %v350_v5, %v351_v4  ;;  %v349_v40 = vsel %vm346_vm2, %v347_v32, %v348_v33  ;;  %v353_v42 = vrot.slane %v1134_v38, 1  ;;  %v851_v48 = vpack.c.bf16 %v773_v44, %v772_v43  ;;  %v785_v5 = vld [vmem:[%s1236_s1 + $0x198] sm:$0xff] }
  0x1c   : > { %810 = vmatpush1.bf16.msra.mxu1 %v809_v54  ;;  %765 = vmatprep.mubr.msk.f32.mxu1 %vm359_vm1, %v352_v14  ;;  %v356_v45 = vsel %vm346_vm2, %v351_v4, %v355_v39  ;;  %v546_v50 = vrot.slane %v302_v34, 2  ;;  %v543_v18 = vsel %vm537_vm4, %v541_v46, %v542_v47  ;;  %v863_v63 = vpack.c.bf16 %v781_v62, %v780_v61  ;;  %v784_v4 = vld [vmem:[%s1236_s1 + $0x190] sm:$0xff] }
  0x1d   : > { %837 = vmatpush1.bf16.msra.mxu0 %v836_v59  ;;  %811 = vmatprep.subr.bf16.mxu1 %v915_v3  ;;  %v354_v49 = vsel %vm346_vm2, %v348_v33, %v353_v42  ;;  %v779_v59 = vld [vmem:[%s1236_s1 + $0x168] sm:$0xff]  ;;  %v866_v2 = vpack.c.bf16 %v783_v1, %v782_v0  ;;  %v869_v6 = vpack.c.bf16 %v785_v5, %v784_v4  ;;  %v544_v9 = vrot.slane %v1134_v38, 2 }
  0x1e   : > { %838 = vmatprep.subr.bf16.mxu0 %v915_v3  ;;  %v547_v54 = vsel %vm537_vm4, %v542_v47, %v546_v50  ;;  %v860_v60 = vpack.c.bf16 %v779_v59, %v778_v58  ;;  %v538_v12 = vrot.slane %v1116_v27, 2 }
  0x20   : > { %813 = vmatpush1.bf16.msra.mxu1 %v812_v7  ;;  %v786_v7 = vld [vmem:[%s1236_s1 + $0x1a0] sm:$0xff] }
  0x21   : > { %840 = vmatpush1.bf16.msra.mxu0 %v839_v11  ;;  %814 = vmatprep.subr.bf16.mxu1 %v915_v3  ;;  %v872_v10 = vpack.c.bf16 %v787_v8, %v786_v7  ;;  %v539_v11 = vrot.slane %v1105_v22, 2 }
  0x22   : > { %841 = vmatprep.subr.bf16.mxu0 %v915_v3 }
  0x23   : > { %v545_v13 = vsel %vm537_vm4, %v539_v11, %v544_v9  ;;  %v540_v14 = vsel %vm537_vm4, %v538_v12, %v539_v11 }
  0x24   : > { %816 = vmatpush1.bf16.msra.mxu1 %v815_v21 }
  0x25   : > { %843 = vmatpush1.bf16.msra.mxu0 %v842_v24  ;;  %817 = vmatprep.subr.bf16.mxu1 %v915_v3 }
  0x26   : > { %844 = vmatprep.subr.bf16.mxu0 %v915_v3 }
  0x28   : > { %819 = vmatpush1.bf16.msra.mxu1 %v818_v31 }
  0x29   : > { %846 = vmatpush1.bf16.msra.mxu0 %v845_v35  ;;  %874 = vmatprep.subr.bf16.mxu1 %v915_v3 }
  0x2a   : > { %847 = vmatprep.subr.bf16.mxu0 %v915_v3 }
  0x2b   : > { %429 = vmatmul.mubr.f32.vlgmr.msra.gmra.mrb[0].mxu1 %v349_v40 }
  0x2c   : > { %768 = vmatmul.mubr.msk.f32.vlgmr.msra.gmra.mrb[0].mxu0 %vm288_vm0, %v278_v15  ;;  %883 = vmatpush1.bf16.msra.mxu1 %v848_v41 }
  0x2d   : > { %849 = vmatpush1.bf16.msra.mxu0 %v848_v41  ;;  %875 = vmatprep.subr.bf16.mxu1 %v915_v3 }
  0x2e   : > { %850 = vmatprep.subr.bf16.mxu0 %v915_v3  ;;  %766 = vmatprep.mubr.msk.f32.mxu1 %vm359_vm1, %v356_v45 }
  0x2f   : > { %769 = vmatprep.mubr.msk.f32.mxu0 %vm359_vm1, %v1062_v57  ;;  %434 = vmatmul.mubr.f32.gmra.mrb[2].mxu1 %v354_v49  ;;  %v857_v57 = vpack.c.bf16 %v777_v56, %v776_v55 }
  0x30   : > { %884 = vmatpush1.bf16.msra.mxu1 %v851_v48  ;;  %513 = vmatmul.mubr.f32.gmra.mrb[2].mxu0 %v1105_v22 }
  0x31   : > { %852 = vmatpush1.bf16.msra.mxu0 %v851_v48  ;;  %876 = vmatprep.subr.bf16.mxu1 %v915_v3 }
  0x32   : > { %853 = vmatprep.subr.bf16.mxu0 %v915_v3  ;;  %788 = vmatprep.mubr.msk.f32.mxu0 %vm359_vm1, %v543_v18 }
  0x33   : > { %789 = vmatprep.mubr.msk.f32.mxu1 %vm359_vm1, %v547_v54 }
  0x34   : > { %885 = vmatpush1.bf16.msra.mxu1 %v854_v53 }
  0x35   : > { %855 = vmatpush1.bf16.msra.mxu0 %v854_v53  ;;  %877 = vmatprep.subr.bf16.mxu1 %v915_v3 }
  0x36   : > { %856 = vmatprep.subr.bf16.mxu0 %v915_v3 }
  0x38   : > { %886 = vmatpush1.bf16.msra.mxu1 %v857_v57 }
  0x39   : > { %858 = vmatpush1.bf16.msra.mxu0 %v857_v57  ;;  %878 = vmatprep.subr.bf16.mxu1 %v915_v3 }
  0x3a   : > { %859 = vmatprep.subr.bf16.mxu0 %v915_v3 }
  0x3c   : > { %887 = vmatpush1.bf16.msra.mxu1 %v860_v60 }
  0x3d   : > { %861 = vmatpush1.bf16.msra.mxu0 %v860_v60  ;;  %879 = vmatprep.subr.bf16.mxu1 %v915_v3 }
  0x3e   : > { %862 = vmatprep.subr.bf16.mxu0 %v915_v3 }
  0x40   : > { %888 = vmatpush1.bf16.msra.mxu1 %v863_v63 }
  0x41   : > { %864 = vmatpush1.bf16.msra.mxu0 %v863_v63  ;;  %880 = vmatprep.subr.bf16.mxu1 %v915_v3 }
  0x42   : > { %865 = vmatprep.subr.bf16.mxu0 %v915_v3 }
  0x44   : > { %889 = vmatpush1.bf16.msra.mxu1 %v866_v2 }
  0x45   : > { %867 = vmatpush1.bf16.msra.mxu0 %v866_v2  ;;  %881 = vmatprep.subr.bf16.mxu1 %v915_v3 }
  0x46   : > { %868 = vmatprep.subr.bf16.mxu0 %v915_v3 }
  0x48   : > { %890 = vmatpush1.bf16.msra.mxu1 %v869_v6 }
  0x49   : > { %870 = vmatpush1.bf16.msra.mxu0 %v869_v6  ;;  %882 = vmatprep.subr.bf16.mxu1 %v915_v3 }
  0x4a   : > { %871 = vmatprep.subr.bf16.mxu0 %v915_v3 }
  0x4c   : > { %891 = vmatpush1.bf16.msra.mxu1 %v872_v10 }
  0x4d   : > { %873 = vmatpush1.bf16.msra.mxu0 %v872_v10 }
  0x4f   : > { %624 = vmatmul.mubr.f32.vlgmr.msra.gmra.mrb[4].mxu1 %v545_v13 }
  0x50   : > { %619 = vmatmul.mubr.f32.vlgmr.msra.gmra.mrb[0].mxu0 %v540_v14 }
  0xfe   : > { %v430_v15 = vpop.f32.mrb[0].mxu1 }
  0xff   : > { %v432_v16 = vpop.f32.mrb[1].mxu1 }
 0x102   : > { %v435_v17 = vpop.f32.mrb[2].mxu1 }
 0x103   : > { %v514_v19 = vpop.f32.mrb[2].mxu0  ;;  %v437_v20 = vpop.f32.mrb[3].mxu1 }
 0x104   : > { %v515_v21 = vadd.f32 %v514_v19, %v435_v17  ;;  %v516_v22 = vpop.f32.mrb[3].mxu0 }
 0x122   : > { %v625_v3 = vpop.f32.mrb[4].mxu1 }
 0x123   : > { %v620_v23 = vpop.f32.mrb[0].mxu0  ;;  %v630_v24 = vadd.f32 %v625_v3, %v515_v21  ;;  %v627_v25 = vpop.f32.mrb[5].mxu1 }
 0x124   : > { %v892_v26 = vadd.f32 %v620_v23, %v430_v15  ;;  %v622_v27 = vpop.f32.mrb[1].mxu0 }
 0x125   : > { %632 = vst [vmem:[%s231_s24 + $0x8] sm:$0xff] %v630_v24  ;;  %v641_v28 = vmul.f32 %v630_v24, %v630_v24 }
 0x126   : > { %631 = vst [vmem:[%s231_s24] sm:$0xff] %v892_v26  ;;  %v640_v29 = vmul.f32 %v892_v26, %v892_v26  ;;  %v633_v30 = vadd.f32 %v892_v26, %v630_v24 }
 0x128   : > { %v634_v31 = vrot.slane %v633_v30, 4  ;;  %v642_v32 = vadd.f32 %v641_v28, %v640_v29 }
 0x12a   : > { %v635_v33 = vadd.f32 %v634_v31, %v633_v30  ;;  %v643_v34 = vrot.slane %v642_v32, 4 }
 0x12c   : > { %v636_v35 = vrot.slane %v635_v33, 2  ;;  %v644_v36 = vadd.f32 %v643_v34, %v642_v32 }
 0x12e   : > { %v637_v37 = vadd.f32 %v636_v35, %v635_v33  ;;  %v645_v38 = vrot.slane %v644_v36, 2 }
 0x130   : > { %v638_v39 = vrot.slane %v637_v37, 1  ;;  %v646_v40 = vadd.f32 %v645_v38, %v644_v36 }
 0x132   : > { %v647_v41 = vrot.slane %v646_v40, 1  ;;  %v639_v42 = vadd.f32 %v638_v39, %v637_v37 }
 0x134   : > { %v648_v43 = vadd.f32 %v647_v41, %v646_v40 }
 0x136   : > { %v650_v44 = vsel %vm649_vm5, %v639_v42, %v648_v43 }
 0x137   : > { %651 = vst [vmem:[%s235_s28] sm:$0x3] %v650_v44 }
 0x138 PF: > { %s16_s18 = sadd.s32 1, %s913_s18  }
 0x139   : > { %p13_p4 = scmp.ge.s32.totalorder %s16_s18, 4  }
 0x13b   :  { %15 = sbr.rel (!%p13_p4) target bundleno = 1 (0x1), region = 80 }

// kernel: tile.39
= control target key start
LH: loop header
LB: loop body
LE: loop exit
PB: predicated region body
PF: predicated region fallthrough
CT: control target
= control target key end

     0   :  { %s131_s10 = smov 120   ;;  %s132_s11 = smov 104   ;;  %vm3_vm0 = vcmask 64512   ;;  %vm9_vm1 = vcmask 1048512   ;;  %vm15_vm2 = vcmask 982912   ;;  %vm21_vm3 = vcmask 917312   ;;  %s207_s0 = inlined_call_operand.vmem [shape: f32[16,8], index: 0, kind: input, shape index: {}]   ;;  %s208_s1 = inlined_call_operand.vmem [shape: f32[1,128], index: 1, kind: output, shape index: {}]  }
   0x1   :  { %v101_v0 = vld [vmem:[%s207_s0 + $0xf] sm:$0x1]   ;;  %v103_v1 = vld [vmem:[%s207_s0 + $0xd] sm:$0x1]   ;;  %v102_v2 = vld [vmem:[%s207_s0 + $0xe] sm:$0x1]  }
   0x2   :  { %7 = vrot.lane.b32.xlu0 %v101_v0, %s131_s10  ;;  %19 = vrot.lane.b32.xlu1 %v103_v1, %s132_s11  ;;  %v104_v3 = vld [vmem:[%s207_s0 + $0xc] sm:$0x1]   ;;  %s133_s16 = smov 112   ;;  %s134_s17 = smov 96   ;;  %v105_v4 = vld [vmem:[%s207_s0 + $0xb] sm:$0x1]  }
   0x3   :  { %v106_v5 = vld [vmem:[%s207_s0 + $0xa] sm:$0x1]   ;;  %v2_v6 = vld [vmem:[%s207_s0] sm:$0x1]   ;;  %s135_s24 = smov 88   ;;  %s136_s25 = smov 80  }
   0x4   :  { %4 = vst.msk [vmem:[#allocation0] sm:$0x1] %vm3_vm0, %v2_v6   ;;  %v107_v7 = vld [vmem:[%s207_s0 + $0x9] sm:$0x1]   ;;  %v108_v8 = vld [vmem:[%s207_s0 + $0x8] sm:$0x1]  }
   0x5   :  { %s137_s30 = smov 72   ;;  %s138_s2 = smov 64   ;;  %v109_v9 = vld [vmem:[%s207_s0 + $0x7] sm:$0x1]   ;;  %v110_v10 = vld [vmem:[%s207_s0 + $0x6] sm:$0x1]  }
   0x6   :  { %13 = vrot.lane.b32.xlu0 %v102_v2, %s133_s16  ;;  %25 = vrot.lane.b32.xlu1 %v104_v3, %s134_s17  ;;  %s139_s7 = smov 56   ;;  %s140_s8 = smov 48   ;;  %v111_v11 = vld [vmem:[%s207_s0 + $0x5] sm:$0x1]   ;;  %v112_v12 = vld [vmem:[%s207_s0 + $0x4] sm:$0x1]  }
   0x7   :  { %s141_s13 = smov 40   ;;  %s142_s14 = smov 32   ;;  %v113_v13 = vld [vmem:[%s207_s0 + $0x3] sm:$0x1]   ;;  %v114_v14 = vld [vmem:[%s207_s0 + $0x2] sm:$0x1]  }
   0x8   :  { %s143_s19 = smov 24   ;;  %s144_s20 = smov 16   ;;  %v115_v15 = vld [vmem:[%s207_s0 + $0x1] sm:$0x1]   ;;  %vm27_vm4 = vcmask 851712   ;;  %vm33_vm5 = vcmask 786112  }
   0x9   :  { %s145_s0 = smov 8   ;;  %vm39_vm6 = vcmask 720512   ;;  %vm45_vm7 = vcmask 654912   ;;  %vm51_vm8 = vcmask 589312   ;;  %vm57_vm9 = vcmask 523712  }
   0xa   :  { %31 = vrot.lane.b32.xlu0 %v105_v4, %s135_s24  ;;  %37 = vrot.lane.b32.xlu1 %v106_v5, %s136_s25  ;;  %vm63_vm10 = vcmask 458112   ;;  %vm69_vm11 = vcmask 392512   ;;  %vm75_vm12 = vcmask 326912   ;;  %vm81_vm13 = vcmask 261312  }
   0xb   :  { %vm87_vm14 = vcmask 195712   ;;  %vm93_vm15 = vcmask 130112  }
   0xe   :  { %43 = vrot.lane.b32.xlu0 %v107_v7, %s137_s30  ;;  %49 = vrot.lane.b32.xlu1 %v108_v8, %s138_s2 }
  0x12   :  { %55 = vrot.lane.b32.xlu0 %v109_v9, %s139_s7  ;;  %61 = vrot.lane.b32.xlu1 %v110_v10, %s140_s8 }
  0x16   :  { %67 = vrot.lane.b32.xlu0 %v111_v11, %s141_s13  ;;  %73 = vrot.lane.b32.xlu1 %v112_v12, %s142_s14 }
  0x1a   :  { %79 = vrot.lane.b32.xlu0 %v113_v13, %s143_s19  ;;  %85 = vrot.lane.b32.xlu1 %v114_v14, %s144_s20 }
  0x1e   :  { %91 = vrot.lane.b32.xlu0 %v115_v15, %s145_s0 }
  0x74   :  { %v8_v16 = vpop.permute.xlu0 %7   ;;  %v20_v17 = vpop.permute.xlu1 %19  }
  0x75   :  { %10 = vst.msk [vmem:[#allocation0] sm:$0x1] %vm9_vm1, %v8_v16  }
  0x78   :  { %v14_v18 = vpop.permute.xlu0 %13   ;;  %v26_v19 = vpop.permute.xlu1 %25  }
  0x79   :  { %16 = vst.msk [vmem:[#allocation0] sm:$0x1] %vm15_vm2, %v14_v18  }
  0x7a   :  { %22 = vst.msk [vmem:[#allocation0] sm:$0x1] %vm21_vm3, %v20_v17  }
  0x7b   :  { %28 = vst.msk [vmem:[#allocation0] sm:$0x1] %vm27_vm4, %v26_v19  }
  0x7c   :  { %v32_v20 = vpop.permute.xlu0 %31   ;;  %v38_v21 = vpop.permute.xlu1 %37  }
  0x7d   :  { %34 = vst.msk [vmem:[#allocation0] sm:$0x1] %vm33_vm5, %v32_v20  }
  0x7e   :  { %40 = vst.msk [vmem:[#allocation0] sm:$0x1] %vm39_vm6, %v38_v21  }
  0x80   :  { %v44_v22 = vpop.permute.xlu0 %43   ;;  %v50_v23 = vpop.permute.xlu1 %49  }
  0x81   :  { %46 = vst.msk [vmem:[#allocation0] sm:$0x1] %vm45_vm7, %v44_v22  }
  0x82   :  { %52 = vst.msk [vmem:[#allocation0] sm:$0x1] %vm51_vm8, %v50_v23  }
  0x84   :  { %v56_v24 = vpop.permute.xlu0 %55   ;;  %v62_v25 = vpop.permute.xlu1 %61  }
  0x85   :  { %58 = vst.msk [vmem:[#allocation0] sm:$0x1] %vm57_vm9, %v56_v24  }
  0x86   :  { %64 = vst.msk [vmem:[#allocation0] sm:$0x1] %vm63_vm10, %v62_v25  }
  0x88   :  { %v68_v26 = vpop.permute.xlu0 %67   ;;  %v74_v27 = vpop.permute.xlu1 %73  }
  0x89   :  { %70 = vst.msk [vmem:[#allocation0] sm:$0x1] %vm69_vm11, %v68_v26  }
  0x8a   :  { %76 = vst.msk [vmem:[#allocation0] sm:$0x1] %vm75_vm12, %v74_v27  }
  0x8c   :  { %v80_v28 = vpop.permute.xlu0 %79   ;;  %v86_v29 = vpop.permute.xlu1 %85  }
  0x8d   :  { %82 = vst.msk [vmem:[#allocation0] sm:$0x1] %vm81_vm13, %v80_v28  }
  0x8e   :  { %88 = vst.msk [vmem:[#allocation0] sm:$0x1] %vm87_vm14, %v86_v29  }
  0x90   :  { %v92_v30 = vpop.permute.xlu0 %91  }
  0x91   :  { %94 = vst.msk [vmem:[#allocation0] sm:$0x1] %vm93_vm15, %v92_v30  }
  0x98   :  { %v98_v31 = vld [vmem:[#allocation0] sm:$0x1] }
  0x99   :  { %100 = vst [vmem:[%s208_s1] sm:$0x1] %v98_v31 }

// kernel: conv_block_forward.5
= control target key start
LH: loop header
LB: loop body
LE: loop exit
PB: predicated region body
PF: predicated region fallthrough
CT: control target
= control target key end

     0   :  { %s104_s0 = inlined_call_operand.vmem [shape: f32[32,128], index: 0, kind: input, shape index: {}]   ;;  %s105_s1 = inlined_call_operand.vmem [shape: f32[1,128], index: 1, kind: input, shape index: {}]   ;;  %s106_s2 = inlined_call_operand.vmem [shape: f32[1,128], index: 2, kind: input, shape index: {}]   ;;  %s107_s3 = inlined_call_operand.vmem [shape: f32[32,128], index: 3, kind: output, shape index: {}]  }
   0x1   :  { %v14_v0 = vld [vmem:[%s104_s0] sm:$0xff]  ;;  %v15_v4 = vld [vmem:[%s104_s0 + $0x8] sm:$0xff]  ;;  %v16_v5 = vld [vmem:[%s104_s0 + $0x10] sm:$0xff] }
   0x2   :  { %v52_v1 = vld [vmem:[%s105_s1] ss:$0 sm:$0xff]  ;;  %v17_v6 = vld [vmem:[%s104_s0 + $0x18] sm:$0xff] }
   0x3   :  { %v53_v2 = vld [vmem:[%s106_s2] ss:$0 sm:$0xff]  ;;  %v25_v3 = vmul.f32 %v52_v1, %v14_v0  ;;  %v26_v7 = vmul.f32 %v52_v1, %v15_v4  ;;  %v27_v8 = vmul.f32 %v52_v1, %v16_v5  ;;  %v28_v9 = vmul.f32 %v52_v1, %v17_v6 }
   0x5   :  { %v36_v10 = vadd.f32 %v53_v2, %v25_v3  ;;  %v37_v11 = vadd.f32 %v53_v2, %v26_v7  ;;  %v38_v12 = vadd.f32 %v53_v2, %v27_v8  ;;  %v39_v13 = vadd.f32 %v53_v2, %v28_v9 }
   0x7   :  { %v40_v14 = vmax.f32 %v36_v10, 0.0  ;;  %v41_v15 = vmax.f32 %v37_v11, 0.0  ;;  %v42_v16 = vmax.f32 %v38_v12, 0.0  ;;  %v43_v17 = vmax.f32 %v39_v13, 0.0 }
   0x9   :  { %44 = vst [vmem:[%s107_s3] sm:$0xff] %v40_v14  ;;  %45 = vst [vmem:[%s107_s3 + $0x8] sm:$0xff] %v41_v15 }
   0xa   :  { %46 = vst [vmem:[%s107_s3 + $0x10] sm:$0xff] %v42_v16  ;;  %47 = vst [vmem:[%s107_s3 + $0x18] sm:$0xff] %v43_v17 }

</bundles_post_ra>
